<compile_context>
chip_gen: v6e
topology: v6e:2x2x1
jax: 0.10.0
libtpu: 0.0.40
codegen_flags: <defaults>
</compile_context>

<pallas_src>
import jax
import jax.numpy as jnp
from jax.experimental import pallas as pl
from jax.experimental.pallas import tpu as pltpu


# ----------------------------------------------------------------------------
# Pallas kernel: masked mean pooling of per-token reward scores.
#   scores_ref, mask_ref : (S, TN) bf16 blocks (S = seq on sublanes,
#                                               TN = item tile on lanes)
#   bias_ref             : (1, 1) f32 scalar in SMEM
#   out_ref              : (1, TN) f32, lane-dense
# ----------------------------------------------------------------------------
def _masked_mean_kernel(scores_ref, mask_ref, bias_ref, out_ref):
    # bf16 in HBM/VMEM, f32 on the VPU and f32 accumulation.
    s = scores_ref[...].astype(jnp.float32)
    m = mask_ref[...].astype(jnp.float32)
    num = jnp.sum(s * m, axis=0, keepdims=True)            # (1, TN) f32
    den = jnp.sum(m, axis=0, keepdims=True)                # (1, TN) f32, exact
    out_ref[...] = num / jnp.maximum(den, 1e-9) + bias_ref[0, 0]


def _pick_tile_n(n, seq, bytes_per_elem=2, budget_bytes=8 << 20, max_tile=2048):
    """Lane-axis tile size: multiple of 128, with the double-buffered streamed
    inputs kept inside a conservative VMEM budget (no need to raise
    vmem_limit_bytes on any of v5e/v6e/v7x)."""
    tn = max_tile
    # 2 streamed inputs x 2 pipeline buffers x (seq * tn * bytes).
    while tn > 128 and 2 * 2 * seq * tn * bytes_per_elem > budget_bytes:
        tn //= 2
    # Never exceed the (128-rounded) problem width.
    return min(tn, 128 * pl.cdiv(n, 128))


def reward_forward(scores_sn, mask_sn, bias11):
    """scores_sn / mask_sn: (S, N) bf16.  Returns per-item rewards: (N,) f32."""
    S, N = scores_sn.shape
    tn = _pick_tile_n(N, S)
    n_pad = pl.cdiv(N, tn) * tn
    if n_pad != N:
        pad = n_pad - N
        # Zero-padded columns have zero mask -> clamped denom -> sliced away.
        scores_sn = jnp.pad(scores_sn, ((0, 0), (0, pad)))
        mask_sn = jnp.pad(mask_sn, ((0, 0), (0, pad)))

    out = pl.pallas_call(
        _masked_mean_kernel,
        out_shape=jax.ShapeDtypeStruct((1, n_pad), jnp.float32),
        grid=(n_pad // tn,),
        in_specs=[
            pl.BlockSpec((S, tn), lambda i: (0, i)),
            pl.BlockSpec((S, tn), lambda i: (0, i)),
            pl.BlockSpec(memory_space=pltpu.MemorySpace.SMEM),
        ],
        out_specs=pl.BlockSpec((1, tn), lambda i: (0, i)),
        compiler_params=pltpu.CompilerParams(
            dimension_semantics=("parallel",)),
    )(scores_sn, mask_sn, bias11)
    return out[0, :N]


# ----------------------------------------------------------------------------
# Plackett-Luce cascade (plain JAX): probs[:, pos] = softmax(sorted[:, pos:])[0]
# ----------------------------------------------------------------------------
def plackett_luce_probs(rewards, temperature):
    x = rewards / temperature
    x_sorted = -jnp.sort(-x, axis=1)                        # descending
    # Stable: per-row max is column 0 because rows are sorted descending.
    ex = jnp.exp(x_sorted - x_sorted[:, :1])
    suffix = jax.lax.cumsum(ex, axis=1, reverse=True)       # sum_{j>=pos} exp
    return ex / suffix


# ----------------------------------------------------------------------------
# Model wrapper (parameter setup + glue gather / reshape / sort in plain JAX).
# ----------------------------------------------------------------------------
class PlackettLuceModelPallas:
    def __init__(self, vocab_size, hidden, temperature=1.0, seed=0):
        k_emb, k_w = jax.random.split(jax.random.PRNGKey(seed))
        self.emb_table = 0.02 * jax.random.normal(
            k_emb, (vocab_size, hidden), dtype=jnp.float32)
        self.head_w = 0.1 * jax.random.normal(
            k_w, (hidden, 1), dtype=jnp.float32)
        self.head_b = jnp.zeros((1, 1), dtype=jnp.float32)
        self.temperature = float(temperature)
        # Fold the linear head into the embedding table once (exact: the head
        # is linear and the pool is a weighted mean) -> per-token scalar
        # scores; stored bf16 so the kernel's HBM stream is half-width.
        self.token_scores = (
            (self.emb_table @ self.head_w)[:, 0].astype(jnp.bfloat16))

    def __call__(self, input_ids_list, attention_mask_list, return_dict=True):
        num_items = len(input_ids_list)
        ids = jnp.stack(input_ids_list, axis=1)              # (B, K, S) int32
        mask = jnp.stack(attention_mask_list, axis=1)        # (B, K, S)
        B, K, S = ids.shape
        assert K == num_items
        N = B * K

        # Glue: gather per-token scalar scores directly in (S, N) layout
        # (seq on sublanes, items on lanes) so the kernel's pooled output is
        # lane-dense.  Mask kept as bf16 (0/1 is exact).
        ids_sn = ids.reshape(N, S).T                         # (S, N)
        scores_sn = self.token_scores[ids_sn]                # (S, N) bf16
        mask_sn = mask.reshape(N, S).T.astype(jnp.bfloat16)  # (S, N) bf16

        # Pallas kernel: masked mean pool -> per-item reward.
        rewards = reward_forward(scores_sn, mask_sn,
                                 self.head_b).reshape(B, K)  # (B, K) f32

        # Plackett-Luce sequential softmax (plain JAX, fused by XLA).
        ranking_probs = plackett_luce_probs(rewards, self.temperature)
        # TODO(synk): use_gumbel=True and top_k paths are not implemented
        #             (both are off by default in the reference module).

        if not return_dict:
            return ranking_probs

        predicted_ranking = jnp.argsort(-rewards, axis=1)
        return {
            "ranking_probabilities": ranking_probs,
            "rewards": rewards,
            "predicted_ranking": predicted_ranking,
            "top_item_prob": ranking_probs[:, 0],
        }


# ----------------------------------------------------------------------------
# Pure-JAX references for sanity checks.
# ----------------------------------------------------------------------------
def _reference(model, input_ids_list, attention_mask_list):
    ids = jnp.stack(input_ids_list, axis=1)                  # (B, K, S)
    mask = jnp.stack(attention_mask_list, axis=1).astype(jnp.float32)
    B, K, S = ids.shape
    # Strict check: same bf16-quantized per-token scores as the kernel path
    # (isolates the kernel's pooling from the storage-dtype choice).
    tok = model.token_scores.astype(jnp.float32)[ids]        # (B, K, S)
    denom = jnp.maximum(jnp.sum(mask, axis=2), 1e-9)         # (B, K)
    rewards = jnp.sum(tok * mask, axis=2) / denom + model.head_b[0, 0]
    # Cascade exactly as the torch reference: per-position softmax head.
    sorted_desc = -jnp.sort(-(rewards / model.temperature), axis=1)
    probs = [jax.nn.softmax(sorted_desc[:, pos:], axis=1)[:, 0]
             for pos in range(K)]
    # Loose check: un-folded f32 reward path (pool embeddings, then head).
    emb = model.emb_table[ids]                               # (B, K, S, H)
    pooled = jnp.sum(emb * mask[..., None], axis=2) / denom[..., None]
    rewards_unfolded = pooled @ model.head_w[:, 0] + model.head_b[0, 0]
    return rewards, jnp.stack(probs, axis=1), rewards_unfolded


if __name__ == "__main__":
    batch, num_items, seq, hidden, vocab = 2, 4, 8, 32, 64
    temperature = 1.0

    model = PlackettLuceModelPallas(vocab, hidden, temperature, seed=0)

    key = jax.random.PRNGKey(0)
    input_ids_list, attention_mask_list = [], []
    for i in range(num_items):
        key, k_ids = jax.random.split(key)
        ids = jax.random.randint(k_ids, (batch, seq), 0, vocab, dtype=jnp.int32)
        # Mask out the last i tokens of each sequence to exercise masking.
        amask = (jnp.arange(seq)[None, :] < (seq - i)).astype(jnp.float32)
        amask = jnp.broadcast_to(amask, (batch, seq))
        input_ids_list.append(ids)
        attention_mask_list.append(amask)

    out = model(input_ids_list, attention_mask_list, return_dict=True)
    out = jax.tree_util.tree_map(jax.block_until_ready, out)

    ref_rewards, ref_probs, ref_rewards_unfolded = _reference(
        model, input_ids_list, attention_mask_list)
    assert jnp.allclose(out["rewards"], ref_rewards, atol=1e-5), \
        "rewards mismatch"
    assert jnp.allclose(out["ranking_probabilities"], ref_probs,
                        atol=1e-5), "ranking prob mismatch"
    assert jnp.allclose(out["top_item_prob"],
                        out["ranking_probabilities"][:, 0]), "top prob mismatch"
    # Folding the head + bf16 token scores stays at quantization-level
    # distance from the un-folded f32 reward model.
    assert jnp.allclose(out["rewards"], ref_rewards_unfolded, atol=5e-3), \
        "folded-head reward drifted from unfolded reference"

    print("KERNEL_OK")
</pallas_src>

<mosaic_0001>
module attributes {stable_mosaic.version = 11 : i64} {
  func.func @_masked_mean_kernel(%arg0: i32, %arg1: memref<8x128xbf16, #tpu.memory_space<vmem>>, %arg2: memref<8x128xbf16, #tpu.memory_space<vmem>>, %arg3: memref<1x1xf32, #tpu.memory_space<smem>>, %arg4: memref<1x128xf32, #tpu.memory_space<vmem>>) attributes {dimension_semantics = [#tpu.dimension_semantics<parallel>], iteration_bounds = array<i64: 1>, scalar_prefetch = 0 : i64, scratch_operands = 0 : i64, tpu.core_type = #tpu.core_type<tc>, window_params = [{transform_indices = @transform_0, window_bounds = array<i64: 8, 128>}, {transform_indices = @transform_1, window_bounds = array<i64: 8, 128>}, {transform_indices = @transform_2, window_bounds = array<i64: 1, 1>}, {transform_indices = @transform_3, window_bounds = array<i64: 1, 128>}]} {
    %c0 = arith.constant 0 : index
    %c0_0 = arith.constant 0 : index
    %0 = vector.load %arg1[%c0, %c0_0] : memref<8x128xbf16, #tpu.memory_space<vmem>>, vector<8x128xbf16>
    %1 = arith.extf %0 : vector<8x128xbf16> to vector<8x128xf32>
    %c0_1 = arith.constant 0 : index
    %c0_2 = arith.constant 0 : index
    %2 = vector.load %arg2[%c0_1, %c0_2] : memref<8x128xbf16, #tpu.memory_space<vmem>>, vector<8x128xbf16>
    %3 = arith.extf %2 : vector<8x128xbf16> to vector<8x128xf32>
    %4 = arith.mulf %1, %3 : vector<8x128xf32>
    %cst = arith.constant dense<0.000000e+00> : vector<128xf32>
    %5 = vector.multi_reduction <add>, %4, %cst [0] : vector<8x128xf32> to vector<128xf32>
    %6 = vector.shape_cast %5 : vector<128xf32> to vector<1x128xf32>
    %cst_3 = arith.constant dense<0.000000e+00> : vector<128xf32>
    %7 = vector.multi_reduction <add>, %3, %cst_3 [0] : vector<8x128xf32> to vector<128xf32>
    %8 = vector.shape_cast %7 : vector<128xf32> to vector<1x128xf32>
    %cst_4 = arith.constant 9.99999971E-10 : f32
    %9 = vector.broadcast %cst_4 : f32 to vector<1x128xf32>
    %10 = arith.maximumf %8, %9 : vector<1x128xf32>
    %11 = arith.divf %6, %10 : vector<1x128xf32>
    %c0_5 = arith.constant 0 : index
    %c0_6 = arith.constant 0 : index
    %12 = memref.load %arg3[%c0_5, %c0_6] : memref<1x1xf32, #tpu.memory_space<smem>>
    %13 = vector.broadcast %12 : f32 to vector<1x128xf32>
    %14 = arith.addf %11, %13 : vector<1x128xf32>
    %c0_7 = arith.constant 0 : index
    %c0_8 = arith.constant 0 : index
    %15 = vector.load %arg4[%c0_7, %c0_8] : memref<1x128xf32, #tpu.memory_space<vmem>>, vector<1x128xf32>
    tpu.vector_store %arg4[%c0_7, %c0_8], %14 {strides = array<i32>} : memref<1x128xf32, #tpu.memory_space<vmem>>, vector<1x128xf32>,
    return
  }
  func.func @transform_0(%arg0: i32) -> (i32, i32) {
    %c0_i32 = arith.constant 0 : i32
    %c0_i32_0 = arith.constant 0 : i32
    return %c0_i32, %arg0 : i32, i32
  }
  func.func @transform_1(%arg0: i32) -> (i32, i32) {
    %c0_i32 = arith.constant 0 : i32
    %c0_i32_0 = arith.constant 0 : i32
    return %c0_i32, %arg0 : i32, i32
  }
  func.func @transform_2(%arg0: i32) -> (i32, i32) {
    %c0_i32 = arith.constant 0 : i32
    %c0_i32_0 = arith.constant 0 : i32
    %c0_i32_1 = arith.constant 0 : i32
    return %c0_i32, %c0_i32_0 : i32, i32
  }
  func.func @transform_3(%arg0: i32) -> (i32, i32) {
    %c0_i32 = arith.constant 0 : i32
    %c0_i32_0 = arith.constant 0 : i32
    return %c0_i32, %arg0 : i32, i32
  }
}

</mosaic_0001>

<bundles_post_ra>
// kernel: tpu_custom_call.1
= control target key start
LH: loop header
LB: loop body
LE: loop exit
PB: predicated region body
PF: predicated region fallthrough
CT: control target
= control target key end

     0   :  { %9 = vsyncpa [#allocation4], 0  ;;  %s186_s0 = inlined_call_operand.hbm [shape: bf16[8,128], index: 0, kind: input, shape index: {}]   ;;  %s187_s1 = inlined_call_operand.hbm [shape: bf16[8,128], index: 1, kind: input, shape index: {}]   ;;  %s188_s2 = inlined_call_operand.<no memory space> [shape: f32[1,1], index: 2, kind: input, shape index: {}]   ;;  %s189_s3 = inlined_call_operand.hbm [shape: f32[1,128], index: 3, kind: output, shape index: {}]  }
   0x1   :  { %10 = vsyncpa [#allocation7], 0 }
   0x2   :  { %11 = vsyncpa [#allocation5], 0  ;;  %s151_s12 = smov [#allocation3]   ;;  %s152_s14 = smov [#allocation6]  }
   0x3   :  { %s18_s13 = sshll.u32 %s151_s12, 4  ;;  %s28_s15 = sshll.u32 %s152_s14, 4  ;;  %s19_s13 = int_to_ptr.vmem [resolvable:$true] %s18_s13  ;;  %s29_s15 = int_to_ptr.vmem [resolvable:$true] %s28_s15 }
   0x4   :  { %s93_s16 = scalar_lea.vmem %s19_s13, 64  ;;  %p98_p1 = scmp.lt.s32.totalorder %s19_s13, %s19_s13 }
   0x5   :  { %p94_p0 = scmp.ne.s32.totalorder %s19_s13, %s93_s16  ;;  %p99_p2 = scmp.lt.s32.totalorder %s93_s16, %s93_s16 }
   0x7   :  { %p100_p3 = por %p99_p2, %p98_p1 }
   0x9   :  { %p101_p4 = pnand %p100_p3, %p94_p0 }
   0xb   :  { %104 = shalt.err (!%p101_p4)
}
   0xc   :  { %21 = dma.hbm_to_vmem [thread:$0]  %s186_s0, 64, %s19_s13, [#allocation4]  }
   0xd   :  { %s113_s19 = scalar_lea.vmem %s29_s15, 64  ;;  %p118_p6 = scmp.lt.s32.totalorder %s29_s15, %s29_s15 }
   0xe   :  { %p114_p5 = scmp.ne.s32.totalorder %s29_s15, %s113_s19  ;;  %p119_p7 = scmp.lt.s32.totalorder %s113_s19, %s113_s19 }
  0x10   :  { %p120_p8 = por %p119_p7, %p118_p6 }
  0x12   :  { %p121_p9 = pnand %p120_p8, %p114_p5 }
  0x14   :  { %124 = shalt.err (!%p121_p9)
}
  0x15   :  { %31 = dma.hbm_to_vmem [thread:$0]  %s187_s1, 64, %s29_s15, [#allocation7]  }
  0x16   :  { %145 = dma.done.wait [#allocation4], 64  }
  0x17   :  { %146 = vsyncadd [#allocation4], 4294967232 }
  0x18   :  { %147 = dma.done.wait [#allocation7], 64  }
  0x19   :  { %148 = vsyncadd [#allocation7], 4294967232  ;;  %v40_v0 = vld [vmem:[#allocation3] sm:$0xf]  ;;  %v42_v1 = vld [vmem:[#allocation6] sm:$0xf]  ;;  %v61_v19 = vstv %s188_s2 }
  0x1a   :  { %v41_v2 = vunpack.c.l.bf16 %v40_v0  ;;  %v43_v3 = vunpack.c.l.bf16 %v42_v1  ;;  %s153_s22 = smov [#allocation8]  }
  0x1b   :  { %s70_s23 = sshll.u32 %s153_s22, 4  ;;  %s71_s23 = int_to_ptr.vmem [resolvable:$true] %s70_s23 }
  0x1c   :  { %v44_v4 = vmul.f32 %v43_v3, %v41_v2  ;;  %v51_v5 = vrot.slane %v43_v3, 4  ;;  %s125_s24 = scalar_lea.vmem %s71_s23, 16  ;;  %s129_s25 = scalar_lea.vmem %s71_s23, 32 }
  0x1d   :  { %p126_p10 = scmp.ne.s32.totalorder %s71_s23, %s125_s24  ;;  %p130_p11 = scmp.lt.s32.totalorder %s71_s23, %s71_s23 }
  0x1e   :  { %v52_v6 = vadd.f32 %v51_v5, %v43_v3  ;;  %v45_v7 = vrot.slane %v44_v4, 4  ;;  %p131_p12 = scmp.lt.s32.totalorder %s129_s25, %s125_s24 }
  0x20   :  { %v53_v8 = vrot.slane %v52_v6, 2  ;;  %v46_v10 = vadd.f32 %v45_v7, %v44_v4  ;;  %p132_p13 = por %p131_p12, %p130_p11 }
  0x22   :  { %v54_v9 = vadd.f32 %v53_v8, %v52_v6  ;;  %v47_v13 = vrot.slane %v46_v10, 2  ;;  %p133_p0 = pnand %p132_p13, %p126_p10 }
  0x24   :  { %v55_v11 = vrot.slane %v54_v9, 1  ;;  %v48_v15 = vadd.f32 %v47_v13, %v46_v10 }
  0x26   :  { %v56_v12 = vadd.f32 %v55_v11, %v54_v9  ;;  %v49_v16 = vrot.slane %v48_v15, 1 }
  0x28   :  { %v57_v14 = vmax.f32 %v56_v12, 1e-09  ;;  %v50_v17 = vadd.f32 %v49_v16, %v48_v15 }
  0x2a   :  { %83 = vrcp.f32 %v57_v14 }
  0x37   :  { %v84_v18 = vpop.eup %83 }
  0x38   :  { %v59_v20 = vmul.f32 %v84_v18, %v50_v17 }
  0x3a   :  { %v62_v21 = vadd.f32 %v61_v19, %v59_v20 }
  0x3c   :  { %63 = vst [vmem:[#allocation8] sm:$0x1] %v62_v21 }
  0x3d   :  { %136 = shalt.err (!%p133_p0)
}
  0x3e   :  { %73 = dma.vmem_to_hbm [thread:$0]  %s71_s23, 16, %s189_s3, [#allocation5]  }
  0x3f   :  { %149 = dma.done.wait [#allocation5], 16  }
  0x40   :  { %150 = vsyncadd [#allocation5], 4294967280 }
  0x41   :  { %77 = vsyncpa [#allocation4], 1 }
  0x42   :  { %78 = vsyncpa [#allocation7], 1 }
  0x43   :  { %79 = vsyncpa [#allocation5], 1 }

</bundles_post_ra>
